<compile_context>
chip_gen: v6e
topology: v6e:2x2x1
jax: 0.10.0
libtpu: 0.0.40
codegen_flags: <defaults>
</compile_context>

<pallas_src>
import functools

import jax
import jax.numpy as jnp
import numpy as np
from jax.experimental import pallas as pl
from jax.experimental.pallas import tpu as pltpu


def gclayer_kernel(x_ref, L2_ref, w_ref, o_ref, ts_ref, slab_ref, *,
                   K, BN, Fin, Fout, compute_dtype):
    """Chebyshev graph-conv for one tile of BN signals.

    x_ref    : (M, BN*Fin)   f32   signals, column = n*Fin + fin
    L2_ref   : (M, M)        cdt   2 * rescaled Laplacian (= 2*(L - I), lmax=2)
    w_ref    : (K*Fin, Fout) f32   Chebyshev weights, row = k*Fin + fin
    o_ref    : (M, BN*Fout)  f32   output, column = n*Fout + fo
    ts_ref   : (K, M, BN*Fin) f32  scratch: all Chebyshev orders (explicit state)
    slab_ref : (M, K*Fin)    f32   scratch: per-signal fused-contraction slab
    """
    cdt = compute_dtype

    # ---- Chebyshev recurrence, batched over all BN signals (wide MXU RHS) ----
    ts_ref[0] = x_ref[...]                                    # T_0 = x
    if K > 1:
        L2 = L2_ref[...]                                      # hoisted 2*Lr
        # T_1 = Lr @ T_0 = 0.5 * (2*Lr @ T_0)   (power-of-two scale: exact)
        ts_ref[1] = 0.5 * jnp.dot(L2, x_ref[...].astype(cdt),
                                  preferred_element_type=jnp.float32)
        for k in range(2, K):
            # T_k = 2*Lr @ T_{k-1} - T_{k-2}    (state kept in f32)
            ts_ref[k] = (
                jnp.dot(L2, ts_ref[k - 1].astype(cdt),
                        preferred_element_type=jnp.float32)
                - ts_ref[k - 2])

    # ---- fused weight contraction: one (M, K*Fin) @ (K*Fin, Fout) per signal ----
    wf = w_ref[...].astype(cdt)
    for n in range(BN):
        for k in range(K):
            slab_ref[:, k * Fin:(k + 1) * Fin] = \
                ts_ref[k, :, n * Fin:(n + 1) * Fin]
        o_ref[:, n * Fout:(n + 1) * Fout] = jnp.dot(
            slab_ref[...].astype(cdt), wf, preferred_element_type=jnp.float32)


def _pick_batch_tile(N, Fin, Fout, target_lanes=512):
    """Largest divisor of N whose blocks stay lane-aligned (mult. of 128) and
    not wider than target_lanes; falls back to the whole batch (block == full
    array, which is always a legal BlockSpec)."""
    best = N
    for bn in range(1, N):
        if N % bn:
            continue
        if (bn * Fin) % 128 or (bn * Fout) % 128:
            continue
        if bn * Fin > target_lanes:
            continue
        best = bn
    return best


def gclayer_forward(x_nfm, L, weight, bias, K, *, use_bf16=False, batch_tile=None):
    """Pallas implementation of GCLayer.forward.

    x_nfm : (N, Fin, M) float32   -- PyTorch layout
    L     : (M, M) float32        -- dense graph Laplacian, eigenvalues in [0, 2]
    weight: (Fin*K, Fout) float32 -- row index = fin*K + k (PyTorch layout)
    bias  : (1, Fout, 1) float32
    returns (N, Fout, M) float32
    """
    N, Fin, M = (int(s) for s in x_nfm.shape)
    Fout = int(weight.shape[1])
    cdt = jnp.bfloat16 if use_bf16 else jnp.float32
    l_bytes = 2 if use_bf16 else 4

    # graph.rescale_L(L, lmax=2) == L - I ; pre-scale by 2 to hoist the per-order
    # 2x out of the recurrence (T_1 undoes it with an exact 0.5x).
    L2 = (2.0 * (L.astype(jnp.float32)
                 - jnp.eye(M, dtype=jnp.float32))).astype(cdt)

    # (N, Fin, M) -> (M, N*Fin), column = n*Fin + fin  (wide MXU RHS layout)
    x_wide = jnp.transpose(x_nfm, (2, 0, 1)).reshape(M, N * Fin).astype(jnp.float32)

    # weight (Fin*K, Fout), row = fin*K + k  ->  (K*Fin, Fout), row = k*Fin + fin
    wf = jnp.transpose(weight.reshape(Fin, K, Fout), (1, 0, 2)) \
            .reshape(K * Fin, Fout).astype(jnp.float32)

    bn = _pick_batch_tile(N, Fin, Fout) if batch_tile is None else batch_tile
    assert N % bn == 0, "batch tile must divide N"
    grid_n = N // bn

    # Explicit VMEM budget: double-buffered blocks + resident scratch + slack.
    # TODO(synk): could also mark constant-index L/w specs pipeline_mode=
    #   pl.Buffered(1) to drop their second buffer on VMEM-tight chips (v7x).
    est = (2 * (M * bn * Fin * 4 + M * bn * Fout * 4 + M * M * l_bytes
                + K * Fin * Fout * 4)
           + K * M * bn * Fin * 4 + M * K * Fin * 4)
    vmem_limit = int(min(max(est + (4 << 20), 32 << 20), 96 << 20))

    flops = 2 * (K - 1) * M * M * N * Fin + 2 * N * M * K * Fin * Fout
    bytes_accessed = (M * N * Fin * 4 + M * M * l_bytes
                      + K * Fin * Fout * 4 + M * N * Fout * 4)

    y = pl.pallas_call(
        functools.partial(gclayer_kernel, K=K, BN=bn, Fin=Fin, Fout=Fout,
                          compute_dtype=cdt),
        out_shape=jax.ShapeDtypeStruct((M, N * Fout), jnp.float32),
        grid=(grid_n,),
        in_specs=[
            pl.BlockSpec((M, bn * Fin), lambda i: (0, i)),
            pl.BlockSpec((M, M), lambda i: (0, 0)),
            pl.BlockSpec((K * Fin, Fout), lambda i: (0, 0)),
        ],
        out_specs=pl.BlockSpec((M, bn * Fout), lambda i: (0, i)),
        scratch_shapes=[
            pltpu.VMEM((K, M, bn * Fin), jnp.float32),
            pltpu.VMEM((M, K * Fin), jnp.float32),
        ],
        compiler_params=pltpu.CompilerParams(
            dimension_semantics=("parallel",),
            vmem_limit_bytes=vmem_limit),
        cost_estimate=pl.CostEstimate(flops=int(max(flops, 1)),
                                      transcendentals=0,
                                      bytes_accessed=int(bytes_accessed)),
    )(x_wide, L2, wf)

    # y[m, n*Fout + fo]  ->  (N, M, Fout) row-major == torch's contiguous
    # (N*M, Fout) matmul result; then the quirky `.view(N, Fout, M)`
    # reinterpretation and the (1, Fout, 1) bias add, exactly as in chebyshev5.
    y = jnp.transpose(y.reshape(M, N, Fout), (1, 0, 2))     # (N, M, Fout)
    y = y.reshape(N, Fout, M)                                # row-major "view"
    return y + bias.astype(jnp.float32)


def gclayer_reference(x_nfm, L, weight, bias, K):
    """Pure-JAX transcription of GCLayer.chebyshev5 (dense L)."""
    N, Fin, M = x_nfm.shape
    Fout = weight.shape[1]
    Lr = L - jnp.eye(M, dtype=L.dtype)
    x0 = jnp.transpose(x_nfm, (2, 1, 0)).reshape(M, Fin * N)
    xs = [x0]
    if K > 1:
        xs.append(Lr @ x0)
    for _ in range(2, K):
        xs.append(2.0 * (Lr @ xs[-1]) - xs[-2])
    xx = jnp.stack(xs, 0).reshape(K, M, Fin, N)
    xx = jnp.transpose(xx, (3, 1, 2, 0)).reshape(N * M, Fin * K)
    y = (xx @ weight).reshape(N, Fout, M)
    return y + bias


def _make_cycle_laplacian(M):
    """Normalized Laplacian of an M-cycle: L = I - A/2, eigenvalues in [0, 2]."""
    adj = np.zeros((M, M), dtype=np.float32)
    idx = np.arange(M)
    adj[idx, (idx + 1) % M] = 1.0
    adj[idx, (idx - 1) % M] = 1.0
    return jnp.asarray(np.eye(M, dtype=np.float32) - adj / 2.0)


if __name__ == "__main__":
    # Small, deterministic problem: N=2 signals, Fin=4 input features,
    # M=16 vertices, Fout=8 output features, Chebyshev order K=3.
    N, Fin, M, Fout, K = 2, 4, 16, 8, 3

    key = jax.random.PRNGKey(0)
    k_x, k_w, k_b = jax.random.split(key, 3)

    x = jax.random.normal(k_x, (N, Fin, M), dtype=jnp.float32)
    L = _make_cycle_laplacian(M)
    # Random (distinct per (k, fin)) weights so a K/Fin transposition in the
    # weight de-interleave would be caught (review correctness concern).
    weight = 0.1 * jax.random.normal(k_w, (Fin * K, Fout), dtype=jnp.float32)
    bias = jax.random.uniform(k_b, (1, Fout, 1), dtype=jnp.float32)

    ref = gclayer_reference(x, L, weight, bias, K)

    out = jax.block_until_ready(gclayer_forward(x, L, weight, bias, K))
    assert out.shape == (N, Fout, M), out.shape
    np.testing.assert_allclose(np.asarray(out), np.asarray(ref),
                               rtol=1e-5, atol=1e-4)

    # bf16 MXU-input path (f32 state/accumulation): loose-tolerance validation.
    out_bf16 = jax.block_until_ready(
        gclayer_forward(x, L, weight, bias, K, use_bf16=True))
    np.testing.assert_allclose(np.asarray(out_bf16), np.asarray(ref),
                               rtol=1e-1, atol=5e-1)

    # Second, odd-sized config to exercise the layout plumbing (f32 path).
    N2, Fin2, M2, Fout2, K2 = 3, 5, 24, 6, 4
    k_x2, k_w2, k_b2 = jax.random.split(jax.random.PRNGKey(0), 3)
    x2 = jax.random.normal(k_x2, (N2, Fin2, M2), dtype=jnp.float32)
    L2m = _make_cycle_laplacian(M2)
    w2 = 0.1 * jax.random.normal(k_w2, (Fin2 * K2, Fout2), dtype=jnp.float32)
    b2 = jax.random.uniform(k_b2, (1, Fout2, 1), dtype=jnp.float32)
    out2 = jax.block_until_ready(gclayer_forward(x2, L2m, w2, b2, K2))
    ref2 = gclayer_reference(x2, L2m, w2, b2, K2)
    np.testing.assert_allclose(np.asarray(out2), np.asarray(ref2),
                               rtol=1e-5, atol=1e-4)

    print("KERNEL_OK")
</pallas_src>

<mosaic_0001>
module attributes {stable_mosaic.version = 11 : i64} {
  func.func @gclayer_kernel(%arg0: i32, %arg1: memref<16x8xf32, #tpu.memory_space<vmem>>, %arg2: memref<16x16xf32, #tpu.memory_space<vmem>>, %arg3: memref<12x8xf32, #tpu.memory_space<vmem>>, %arg4: memref<16x16xf32, #tpu.memory_space<vmem>>, %arg5: memref<3x16x8xf32, #tpu.memory_space<vmem>>, %arg6: memref<16x12xf32, #tpu.memory_space<vmem>>) attributes {dimension_semantics = [#tpu.dimension_semantics<parallel>], iteration_bounds = array<i64: 1>, scalar_prefetch = 0 : i64, scratch_operands = 2 : i64, tpu.core_type = #tpu.core_type<tc>, window_params = [{transform_indices = @transform_0, window_bounds = array<i64: 16, 8>}, {pipeline_mode = #tpu.pipeline_mode<synchronous>, transform_indices = @transform_1, window_bounds = array<i64: 16, 16>}, {pipeline_mode = #tpu.pipeline_mode<synchronous>, transform_indices = @transform_2, window_bounds = array<i64: 12, 8>}, {transform_indices = @transform_3, window_bounds = array<i64: 16, 16>}]} {
    %c0 = arith.constant 0 : index
    %c0_0 = arith.constant 0 : index
    %0 = vector.load %arg1[%c0, %c0_0] : memref<16x8xf32, #tpu.memory_space<vmem>>, vector<16x8xf32>
    %c0_1 = arith.constant 0 : index
    %c0_2 = arith.constant 0 : index
    %c0_3 = arith.constant 0 : index
    %1 = vector.load %arg5[%c0_1, %c0_2, %c0_3] : memref<3x16x8xf32, #tpu.memory_space<vmem>>, vector<1x16x8xf32>
    %2 = vector.shape_cast %1 : vector<1x16x8xf32> to vector<16x8xf32>
    %3 = vector.shape_cast %0 : vector<16x8xf32> to vector<1x16x8xf32>
    tpu.vector_store %arg5[%c0_1, %c0_2, %c0_3], %3 {strides = array<i32>} : memref<3x16x8xf32, #tpu.memory_space<vmem>>, vector<1x16x8xf32>,
    %c0_4 = arith.constant 0 : index
    %c0_5 = arith.constant 0 : index
    %4 = vector.load %arg2[%c0_4, %c0_5] : memref<16x16xf32, #tpu.memory_space<vmem>>, vector<16x16xf32>
    %c0_6 = arith.constant 0 : index
    %c0_7 = arith.constant 0 : index
    %5 = vector.load %arg1[%c0_6, %c0_7] : memref<16x8xf32, #tpu.memory_space<vmem>>, vector<16x8xf32>
    %cst = arith.constant dense<0.000000e+00> : vector<16x8xf32>
    %6 = tpu.matmul %4, %5, %cst {dimension_numbers = #tpu.dot_dimension_numbers<[1], [0], [0], [1], [0, 0, 1, 1], [], []>} : vector<16x16xf32>, vector<16x8xf32>, vector<16x8xf32> -> vector<16x8xf32>
    %cst_8 = arith.constant 5.000000e-01 : f32
    %7 = vector.broadcast %cst_8 : f32 to vector<16x8xf32>
    %8 = arith.mulf %7, %6 : vector<16x8xf32>
    %c1 = arith.constant 1 : index
    %c0_9 = arith.constant 0 : index
    %c0_10 = arith.constant 0 : index
    %9 = vector.load %arg5[%c1, %c0_9, %c0_10] : memref<3x16x8xf32, #tpu.memory_space<vmem>>, vector<1x16x8xf32>
    %10 = vector.shape_cast %9 : vector<1x16x8xf32> to vector<16x8xf32>
    %11 = vector.shape_cast %8 : vector<16x8xf32> to vector<1x16x8xf32>
    tpu.vector_store %arg5[%c1, %c0_9, %c0_10], %11 {strides = array<i32>} : memref<3x16x8xf32, #tpu.memory_space<vmem>>, vector<1x16x8xf32>,
    %c1_11 = arith.constant 1 : index
    %c0_12 = arith.constant 0 : index
    %c0_13 = arith.constant 0 : index
    %12 = vector.load %arg5[%c1_11, %c0_12, %c0_13] : memref<3x16x8xf32, #tpu.memory_space<vmem>>, vector<1x16x8xf32>
    %13 = vector.shape_cast %12 : vector<1x16x8xf32> to vector<16x8xf32>
    %cst_14 = arith.constant dense<0.000000e+00> : vector<16x8xf32>
    %14 = tpu.matmul %4, %13, %cst_14 {dimension_numbers = #tpu.dot_dimension_numbers<[1], [0], [0], [1], [0, 0, 1, 1], [], []>} : vector<16x16xf32>, vector<16x8xf32>, vector<16x8xf32> -> vector<16x8xf32>
    %c0_15 = arith.constant 0 : index
    %c0_16 = arith.constant 0 : index
    %c0_17 = arith.constant 0 : index
    %15 = vector.load %arg5[%c0_15, %c0_16, %c0_17] : memref<3x16x8xf32, #tpu.memory_space<vmem>>, vector<1x16x8xf32>
    %16 = vector.shape_cast %15 : vector<1x16x8xf32> to vector<16x8xf32>
    %17 = arith.subf %14, %16 : vector<16x8xf32>
    %c2 = arith.constant 2 : index
    %c0_18 = arith.constant 0 : index
    %c0_19 = arith.constant 0 : index
    %18 = vector.load %arg5[%c2, %c0_18, %c0_19] : memref<3x16x8xf32, #tpu.memory_space<vmem>>, vector<1x16x8xf32>
    %19 = vector.shape_cast %18 : vector<1x16x8xf32> to vector<16x8xf32>
    %20 = vector.shape_cast %17 : vector<16x8xf32> to vector<1x16x8xf32>
    tpu.vector_store %arg5[%c2, %c0_18, %c0_19], %20 {strides = array<i32>} : memref<3x16x8xf32, #tpu.memory_space<vmem>>, vector<1x16x8xf32>,
    %c0_20 = arith.constant 0 : index
    %c0_21 = arith.constant 0 : index
    %21 = vector.load %arg3[%c0_20, %c0_21] : memref<12x8xf32, #tpu.memory_space<vmem>>, vector<12x8xf32>
    %c0_22 = arith.constant 0 : index
    %c0_23 = arith.constant 0 : index
    %c0_24 = arith.constant 0 : index
    %22 = vector.load %arg5[%c0_22, %c0_23, %c0_24] : memref<3x16x8xf32, #tpu.memory_space<vmem>>, vector<1x16x4xf32>
    %23 = vector.shape_cast %22 : vector<1x16x4xf32> to vector<16x4xf32>
    %c0_25 = arith.constant 0 : index
    %c0_26 = arith.constant 0 : index
    %24 = vector.load %arg6[%c0_25, %c0_26] : memref<16x12xf32, #tpu.memory_space<vmem>>, vector<16x4xf32>
    tpu.vector_store %arg6[%c0_25, %c0_26], %23 {strides = array<i32>} : memref<16x12xf32, #tpu.memory_space<vmem>>, vector<16x4xf32>,
    %c1_27 = arith.constant 1 : index
    %c0_28 = arith.constant 0 : index
    %c0_29 = arith.constant 0 : index
    %25 = vector.load %arg5[%c1_27, %c0_28, %c0_29] : memref<3x16x8xf32, #tpu.memory_space<vmem>>, vector<1x16x4xf32>
    %26 = vector.shape_cast %25 : vector<1x16x4xf32> to vector<16x4xf32>
    %c0_30 = arith.constant 0 : index
    %c4 = arith.constant 4 : index
    %27 = vector.load %arg6[%c0_30, %c4] : memref<16x12xf32, #tpu.memory_space<vmem>>, vector<16x4xf32>
    tpu.vector_store %arg6[%c0_30, %c4], %26 {strides = array<i32>} : memref<16x12xf32, #tpu.memory_space<vmem>>, vector<16x4xf32>,
    %c2_31 = arith.constant 2 : index
    %c0_32 = arith.constant 0 : index
    %c0_33 = arith.constant 0 : index
    %28 = vector.load %arg5[%c2_31, %c0_32, %c0_33] : memref<3x16x8xf32, #tpu.memory_space<vmem>>, vector<1x16x4xf32>
    %29 = vector.shape_cast %28 : vector<1x16x4xf32> to vector<16x4xf32>
    %c0_34 = arith.constant 0 : index
    %c8 = arith.constant 8 : index
    %30 = vector.load %arg6[%c0_34, %c8] : memref<16x12xf32, #tpu.memory_space<vmem>>, vector<16x4xf32>
    tpu.vector_store %arg6[%c0_34, %c8], %29 {strides = array<i32>} : memref<16x12xf32, #tpu.memory_space<vmem>>, vector<16x4xf32>,
    %c0_35 = arith.constant 0 : index
    %c0_36 = arith.constant 0 : index
    %31 = vector.load %arg6[%c0_35, %c0_36] : memref<16x12xf32, #tpu.memory_space<vmem>>, vector<16x12xf32>
    %cst_37 = arith.constant dense<0.000000e+00> : vector<16x8xf32>
    %32 = tpu.matmul %31, %21, %cst_37 {dimension_numbers = #tpu.dot_dimension_numbers<[1], [0], [0], [1], [0, 0, 1, 1], [], []>} : vector<16x12xf32>, vector<12x8xf32>, vector<16x8xf32> -> vector<16x8xf32>
    %c0_38 = arith.constant 0 : index
    %c0_39 = arith.constant 0 : index
    %33 = vector.load %arg4[%c0_38, %c0_39] : memref<16x16xf32, #tpu.memory_space<vmem>>, vector<16x8xf32>
    tpu.vector_store %arg4[%c0_38, %c0_39], %32 {strides = array<i32>} : memref<16x16xf32, #tpu.memory_space<vmem>>, vector<16x8xf32>,
    %c0_40 = arith.constant 0 : index
    %c0_41 = arith.constant 0 : index
    %c4_42 = arith.constant 4 : index
    %34 = vector.load %arg5[%c0_40, %c0_41, %c4_42] : memref<3x16x8xf32, #tpu.memory_space<vmem>>, vector<1x16x4xf32>
    %35 = vector.shape_cast %34 : vector<1x16x4xf32> to vector<16x4xf32>
    %c0_43 = arith.constant 0 : index
    %c0_44 = arith.constant 0 : index
    %36 = vector.load %arg6[%c0_43, %c0_44] : memref<16x12xf32, #tpu.memory_space<vmem>>, vector<16x4xf32>
    tpu.vector_store %arg6[%c0_43, %c0_44], %35 {strides = array<i32>} : memref<16x12xf32, #tpu.memory_space<vmem>>, vector<16x4xf32>,
    %c1_45 = arith.constant 1 : index
    %c0_46 = arith.constant 0 : index
    %c4_47 = arith.constant 4 : index
    %37 = vector.load %arg5[%c1_45, %c0_46, %c4_47] : memref<3x16x8xf32, #tpu.memory_space<vmem>>, vector<1x16x4xf32>
    %38 = vector.shape_cast %37 : vector<1x16x4xf32> to vector<16x4xf32>
    %c0_48 = arith.constant 0 : index
    %c4_49 = arith.constant 4 : index
    %39 = vector.load %arg6[%c0_48, %c4_49] : memref<16x12xf32, #tpu.memory_space<vmem>>, vector<16x4xf32>
    tpu.vector_store %arg6[%c0_48, %c4_49], %38 {strides = array<i32>} : memref<16x12xf32, #tpu.memory_space<vmem>>, vector<16x4xf32>,
    %c2_50 = arith.constant 2 : index
    %c0_51 = arith.constant 0 : index
    %c4_52 = arith.constant 4 : index
    %40 = vector.load %arg5[%c2_50, %c0_51, %c4_52] : memref<3x16x8xf32, #tpu.memory_space<vmem>>, vector<1x16x4xf32>
    %41 = vector.shape_cast %40 : vector<1x16x4xf32> to vector<16x4xf32>
    %c0_53 = arith.constant 0 : index
    %c8_54 = arith.constant 8 : index
    %42 = vector.load %arg6[%c0_53, %c8_54] : memref<16x12xf32, #tpu.memory_space<vmem>>, vector<16x4xf32>
    tpu.vector_store %arg6[%c0_53, %c8_54], %41 {strides = array<i32>} : memref<16x12xf32, #tpu.memory_space<vmem>>, vector<16x4xf32>,
    %c0_55 = arith.constant 0 : index
    %c0_56 = arith.constant 0 : index
    %43 = vector.load %arg6[%c0_55, %c0_56] : memref<16x12xf32, #tpu.memory_space<vmem>>, vector<16x12xf32>
    %cst_57 = arith.constant dense<0.000000e+00> : vector<16x8xf32>
    %44 = tpu.matmul %43, %21, %cst_57 {dimension_numbers = #tpu.dot_dimension_numbers<[1], [0], [0], [1], [0, 0, 1, 1], [], []>} : vector<16x12xf32>, vector<12x8xf32>, vector<16x8xf32> -> vector<16x8xf32>
    %c0_58 = arith.constant 0 : index
    %c8_59 = arith.constant 8 : index
    %45 = vector.load %arg4[%c0_58, %c8_59] : memref<16x16xf32, #tpu.memory_space<vmem>>, vector<16x8xf32>
    tpu.vector_store %arg4[%c0_58, %c8_59], %44 {strides = array<i32>} : memref<16x16xf32, #tpu.memory_space<vmem>>, vector<16x8xf32>,
    return
  }
  func.func @transform_0(%arg0: i32) -> (i32, i32) {
    %c0_i32 = arith.constant 0 : i32
    %c0_i32_0 = arith.constant 0 : i32
    return %c0_i32, %arg0 : i32, i32
  }
  func.func @transform_1(%arg0: i32) -> (i32, i32) {
    %c0_i32 = arith.constant 0 : i32
    %c0_i32_0 = arith.constant 0 : i32
    %c0_i32_1 = arith.constant 0 : i32
    return %c0_i32, %c0_i32_0 : i32, i32
  }
  func.func @transform_2(%arg0: i32) -> (i32, i32) {
    %c0_i32 = arith.constant 0 : i32
    %c0_i32_0 = arith.constant 0 : i32
    %c0_i32_1 = arith.constant 0 : i32
    return %c0_i32, %c0_i32_0 : i32, i32
  }
  func.func @transform_3(%arg0: i32) -> (i32, i32) {
    %c0_i32 = arith.constant 0 : i32
    %c0_i32_0 = arith.constant 0 : i32
    return %c0_i32, %arg0 : i32, i32
  }
}

</mosaic_0001>

<bundles_post_ra>
// kernel: tpu_custom_call.1
= control target key start
LH: loop header
LB: loop body
LE: loop exit
PB: predicated region body
PF: predicated region fallthrough
CT: control target
= control target key end

     0   :  { %vm24_vm0 = vcmask 130048   ;;  %vm17_vm1 = vcmask 64512   ;;  %s622_s0 = inlined_call_operand.vmem [shape: f32[16,8], index: 0, kind: input, shape index: {}]   ;;  %s623_s1 = inlined_call_operand.vmem [shape: f32[16,16], index: 1, kind: input, shape index: {}]   ;;  %s624_s2 = inlined_call_operand.vmem [shape: f32[12,8], index: 2, kind: input, shape index: {}]   ;;  %s625_s3 = inlined_call_operand.hbm [shape: f32[16,16], index: 3, kind: output, shape index: {}]  }
   0x1   :  { %v23_v0 = vld [vmem:[%s622_s0 + $0x8] sm:$0xff]  ;;  %v22_v1 = vld [vmem:[%s622_s0] sm:$0xff] }
   0x2   :  { %v20_v2 = vld [vmem:[%s623_s1] sm:$0xff]  ;;  %482 = vmatprep.subr.mxu0 %v23_v0  ;;  %18 = vst.msk [vmem:[#allocation2] sm:$0xff] %vm17_vm1, %v22_v1  ;;  %19 = vst.msk [vmem:[#allocation2 + $0x8] sm:$0xff] %vm17_vm1, %v23_v0 }
   0x3   :  { %486 = vmatprep.mubr.msk.f32.mxu0 %vm24_vm0, %v20_v2 }
   0x4   :  { %8 = vsyncpa [#allocation5], 0  ;;  %483 = vmatpush3.msra.mxu0 %v23_v0  ;;  %v21_v3 = vld [vmem:[%s623_s1 + $0x8] sm:$0xff]  ;;  %493 = vmatprep.mubr.msk.f32.mxu1 %vm24_vm0, %v20_v2  ;;  %vm199_vm2 = vcmask 31744   ;;  %s537_s0 = smov 4   ;;  %s538_s1 = smov 124  }
   0x5   :  { %484 = vmatprep.subr.mxu0 %v22_v1  ;;  %vm212_vm3 = vcmask 64544   ;;  %v196_v18 = vld [vmem:[%s624_s2 + $0x8] sm:$0xf]  ;;  %vm237_vm4 = vcmask 1043456   ;;  %v195_v19 = vld [vmem:[%s624_s2] sm:$0xff]  ;;  %s539_s24 = smov 8  }
   0x6   :  { %485 = vmatpush3.msra.mxu0 %v22_v1  ;;  %vm225_vm5 = vcmask 97344   ;;  %vm230_vm6 = vcmask 97280   ;;  %vm437_vm7 = vcmask 130112   ;;  %s540_s2 = smov [#allocation4]  }
   0x7   :  { %487 = vmatmul.mubr.msk.f32.vlgmr.msra.gmra.mxu0 %vm24_vm0, %v21_v3  ;;  %496 = vmatprep.subr.msk.mxu0 %vm237_vm4, %v196_v18  ;;  %s445_s25 = sshll.u32 %s540_s2, 4  ;;  %s446_s25 = int_to_ptr.vmem [resolvable:$true] %s445_s25 }
   0x8   :  { %497 = vmatpush3.msk.msra.mxu0 %vm237_vm4, %v196_v18  ;;  %s515_s26 = scalar_lea.vmem %s446_s25, 256  ;;  %p520_p1 = scmp.lt.s32.totalorder %s446_s25, %s446_s25 }
   0x9   :  { %v197_v4 = vld [vmem:[#allocation2] sm:$0xff]  ;;  %v198_v8 = vld [vmem:[#allocation2 + $0x8] sm:$0xff]  ;;  %498 = vmatprep.subr.mxu0 %v195_v19  ;;  %p516_p0 = scmp.ne.s32.totalorder %s446_s25, %s515_s26  ;;  %p521_p2 = scmp.lt.s32.totalorder %s515_s26, %s515_s26 }
   0xa   :  { %200 = vst.msk [vmem:[#allocation3] sm:$0xff] %vm199_vm2, %v197_v4  ;;  %201 = vst.msk [vmem:[#allocation3 + $0x8] sm:$0xff] %vm199_vm2, %v198_v8  ;;  %499 = vmatpush3.msra.mxu0 %v195_v19 }
   0xb   :  { %p522_p3 = por %p521_p2, %p520_p1 }
   0xd   :  { %p523_p4 = pnand %p522_p3, %p516_p0 }
  0xc7   :  { %v488_v5 = vpop.f32.mrf.mxu0 }
  0xc8   :  { %v107_v6 = vmul.f32 0.5, %v488_v5 }
  0xc9   :  { %v97_v7 = vpop.f32.mrf.mxu0 }
  0xca   :  { %110 = vst.msk [vmem:[#allocation2 + $0x18] sm:$0xff] %vm17_vm1, %v107_v6  ;;  %v106_v9 = vmul.f32 0.5, %v97_v7 }
  0xcc   :  { %109 = vst.msk [vmem:[#allocation2 + $0x10] sm:$0xff] %vm17_vm1, %v106_v9 }
  0xd1   :  { %v112_v10 = vld [vmem:[#allocation2 + $0x18] sm:$0xff] }
  0xd2   :  { %489 = vmatprep.subr.mxu1 %v112_v10 }
  0xd3   :  { %490 = vmatpush3.msra.mxu1 %v112_v10  ;;  %v202_v11 = vld [vmem:[#allocation2 + $0x10] sm:$0xff] }
  0xd4   :  { %206 = vrot.lane.b32.xlu0 %v202_v11, %s537_s0  ;;  %491 = vmatprep.subr.mxu1 %v202_v11 }
  0xd5   :  { %492 = vmatpush3.msra.mxu1 %v202_v11 }
  0xd6   :  { %494 = vmatmul.mubr.msk.f32.vlgmr.msra.gmra.mxu1 %vm24_vm0, %v21_v3  ;;  %503 = vmatprep.subr.msk.mxu1 %vm237_vm4, %v196_v18 }
  0xd7   :  { %504 = vmatpush3.msk.msra.mxu1 %vm237_vm4, %v196_v18 }
  0xd8   :  { %208 = vrot.lane.b32.xlu0 %v112_v10, %s537_s0  ;;  %505 = vmatprep.subr.mxu1 %v195_v19 }
  0xd9   :  { %506 = vmatpush3.msra.mxu1 %v195_v19 }
  0xdc   :  { %322 = vrot.lane.b32.xlu0 %v197_v4, %s538_s1 }
 0x146   :  { %v207_v12 = vpop.permute.xlu0 %206 }
 0x147   :  { %213 = vst.msk [vmem:[#allocation3] sm:$0xff] %vm212_vm3, %v207_v12 }
 0x14a   :  { %v209_v13 = vpop.permute.xlu0 %208 }
 0x14b   :  { %214 = vst.msk [vmem:[#allocation3 + $0x8] sm:$0xff] %vm212_vm3, %v209_v13 }
 0x14e   :  { %v323_v23 = vpop.permute.xlu0 %322 }
 0x196   :  { %v495_v14 = vpop.f32.mrf.mxu1 }
 0x197   :  { %v191_v15 = vsub.f32 %v495_v14, %v198_v8 }
 0x198   :  { %v179_v16 = vpop.f32.mrf.mxu1 }
 0x199   :  { %194 = vst.msk [vmem:[#allocation2 + $0x28] sm:$0xff] %vm17_vm1, %v191_v15  ;;  %v190_v17 = vsub.f32 %v179_v16, %v197_v4 }
 0x19b   :  { %193 = vst.msk [vmem:[#allocation2 + $0x20] sm:$0xff] %vm17_vm1, %v190_v17 }
 0x1a0   :  { %v216_v21 = vld [vmem:[#allocation2 + $0x28] sm:$0xff] }
 0x1a2   :  { %v334_v20 = vld [vmem:[#allocation2 + $0x20] sm:$0xff] }
 0x1a3   :  { %338 = vrot.lane.b32.xlu0 %v334_v20, %s537_s0  ;;  %219 = vrot.lane.b32.xlu1 %v334_v20, %s539_s24 }
 0x1a7   :  { %221 = vrot.lane.b32.xlu1 %v216_v21, %s539_s24 }
 0x1ab   :  { %324 = vrot.lane.b32.xlu1 %v198_v8, %s538_s1 }
 0x1af   :  { %340 = vrot.lane.b32.xlu1 %v216_v21, %s537_s0 }
 0x215   :  { %v220_v22 = vpop.permute.xlu1 %219  ;;  %v339_v27 = vpop.permute.xlu0 %338 }
 0x216   :  { %226 = vst.msk [vmem:[#allocation3] sm:$0xff] %vm225_vm5, %v220_v22 }
 0x219   :  { %v222_v24 = vpop.permute.xlu1 %221 }
 0x21a   :  { %227 = vst.msk [vmem:[#allocation3 + $0x8] sm:$0xff] %vm225_vm5, %v222_v24 }
 0x21d   :  { %v325_v25 = vpop.permute.xlu1 %324  ;;  %v228_v26 = vld [vmem:[#allocation3] sm:$0xff] }
 0x21e   :  { %500 = vmatprep.mubr.msk.f32.mxu0 %vm230_vm6, %v228_v26  ;;  %328 = vst.msk [vmem:[#allocation3] sm:$0xff] %vm199_vm2, %v323_v23 }
 0x21f   :  { %332 = vst.msk [vmem:[#allocation3] sm:$0xff] %vm212_vm3, %v202_v11 }
 0x220   :  { %344 = vst.msk [vmem:[#allocation3] sm:$0xff] %vm225_vm5, %v339_v27 }
 0x221   :  { %v229_v28 = vld [vmem:[#allocation3 + $0x8] sm:$0xff]  ;;  %v341_v29 = vpop.permute.xlu1 %340 }
 0x222   :  { %329 = vst.msk [vmem:[#allocation3 + $0x8] sm:$0xff] %vm199_vm2, %v325_v25  ;;  %501 = vmatmul.mubr.msk.f32.vlgmr.msra.gmra.mxu0 %vm230_vm6, %v229_v28 }
 0x223   :  { %333 = vst.msk [vmem:[#allocation3 + $0x8] sm:$0xff] %vm212_vm3, %v112_v10 }
 0x224   :  { %345 = vst.msk [vmem:[#allocation3 + $0x8] sm:$0xff] %vm225_vm5, %v341_v29 }
 0x227   :  { %v346_v30 = vld [vmem:[#allocation3] sm:$0xff] }
 0x228   :  { %507 = vmatprep.mubr.msk.f32.mxu1 %vm230_vm6, %v346_v30 }
 0x22b   :  { %v347_v31 = vld [vmem:[#allocation3 + $0x8] sm:$0xff] }
 0x22c   :  { %508 = vmatmul.mubr.msk.f32.vlgmr.msra.gmra.mxu1 %vm230_vm6, %v347_v31 }
 0x2e2   :  { %v502_v32 = vpop.f32.mrf.mxu0 }
 0x2e3   :  { %317 = vst.msk [vmem:[#allocation4 + $0x8] sm:$0xff] %vm17_vm1, %v502_v32 }
 0x2e4   :  { %v307_v33 = vpop.f32.mrf.mxu0 }
 0x2e5   :  { %316 = vst.msk [vmem:[#allocation4] sm:$0xff] %vm17_vm1, %v307_v33 }
 0x2ec   :  { %v509_v34 = vpop.f32.mrf.mxu1 }
 0x2ed   :  { %433 = vrot.lane.b32.xlu1 %v509_v34, %s539_s24 }
 0x2ee   :  { %v420_v35 = vpop.f32.mrf.mxu1 }
 0x2ef   :  { %431 = vrot.lane.b32.xlu0 %v420_v35, %s539_s24 }
 0x35f   :  { %v434_v36 = vpop.permute.xlu1 %433 }
 0x360   :  { %439 = vst.msk [vmem:[#allocation4 + $0x8] sm:$0xff] %vm437_vm7, %v434_v36 }
 0x361   :  { %v432_v37 = vpop.permute.xlu0 %431 }
 0x362   :  { %438 = vst.msk [vmem:[#allocation4] sm:$0xff] %vm437_vm7, %v432_v37 }
 0x363   :  { %526 = shalt.err (!%p523_p4)
}
 0x364   :  { %s541_s27 = smov 128  }
 0x365   :  { %451 = dma.vmem_to_hbm [thread:$0]  %s446_s25, 256, %s625_s3, [#allocation5], %s541_s27, %s541_s27, %s539_s24  }
 0x366   :  { %535 = dma.done.wait [#allocation5], 256  }
 0x367   :  { %536 = vsyncadd [#allocation5], 4294967040 }
 0x368   :  { %455 = vsyncpa [#allocation5], 1 }

</bundles_post_ra>
